<compile_context>
chip_gen: v5e
topology: v5e:2x2
jax: 0.10.0
libtpu: 0.0.40
codegen_flags: <defaults>
</compile_context>

<pallas_src>
import functools

import jax
import jax.numpy as jnp
from jax.experimental import pallas as pl
from jax.experimental.pallas import tpu as pltpu


def _round_up(x, m):
    return (x + m - 1) // m * m


def _make_kernel(*, affine, relu, multi_k):
    """Build the conv+BN+ReLU kernel body.

    affine:  apply per-output-channel scale/bias (folded BN and/or conv bias).
    relu:    apply ReLU in the epilogue.
    multi_k: K axis is tiled on the grid (accumulate into resident o_ref).
    """

    def epilogue(acc, s, b):
        if affine:
            acc = acc * s + b
        if relu:
            acc = jnp.maximum(acc, 0.0)
        return acc

    if multi_k:
        def kernel(*refs):
            if affine:
                p_ref, w_ref, s_ref, b_ref, o_ref = refs
            else:
                p_ref, w_ref, o_ref = refs
                s_ref = b_ref = None
            k = pl.program_id(2)

            @pl.when(k == 0)
            def _():
                o_ref[...] = jnp.zeros_like(o_ref)

            # Output block index_map ignores k -> block is VMEM-resident across
            # the K sweep; accumulate directly into it (no acc scratch).
            o_ref[...] += jnp.dot(p_ref[...], w_ref[...],
                                  preferred_element_type=jnp.float32)

            @pl.when(k == pl.num_programs(2) - 1)
            def _():
                o_ref[...] = epilogue(
                    o_ref[...],
                    s_ref[...] if affine else None,
                    b_ref[...] if affine else None).astype(o_ref.dtype)
    else:
        def kernel(*refs):
            if affine:
                p_ref, w_ref, s_ref, b_ref, o_ref = refs
            else:
                p_ref, w_ref, o_ref = refs
                s_ref = b_ref = None
            acc = jnp.dot(p_ref[...], w_ref[...],
                          preferred_element_type=jnp.float32)
            acc = epilogue(acc,
                           s_ref[...] if affine else None,
                           b_ref[...] if affine else None)
            o_ref[...] = acc.astype(o_ref.dtype)

    return kernel


def _im2col_nhwc(x_nhwc, kh, kw, stride, padding):
    """x_nhwc: (N, H, W, C) -> patches (N*H_out*W_out, kh*kw*C).

    Row order: (N, H_out, W_out).  Column (K) order: (kh, kw, C_in), matching
    weight.transpose(0, 2, 3, 1).reshape(C_out, -1).  Channel-last slices +
    last-axis concat keep the reshape layout-trivial (no transpose of the
    kh*kw-amplified tensor).
    """
    N, H, W, C = x_nhwc.shape
    H_out = (H + 2 * padding - kh) // stride + 1
    W_out = (W + 2 * padding - kw) // stride + 1
    xp = jnp.pad(x_nhwc,
                 ((0, 0), (padding, padding), (padding, padding), (0, 0)))
    cols = []
    for i in range(kh):
        for j in range(kw):
            cols.append(xp[:, i:i + (H_out - 1) * stride + 1:stride,
                              j:j + (W_out - 1) * stride + 1:stride, :])
    p = cols[0] if len(cols) == 1 else jnp.concatenate(cols, axis=-1)
    return p.reshape(N * H_out * W_out, kh * kw * C), H_out, W_out


def basic_conv_forward(x, weight, bn_params=None, conv_bias=None, *, stride=1,
                       padding=0, relu=True, bn=True, tile_m=1024):
    """x: (N, C_in, H, W) NCHW f32.  weight: (C_out, C_in, kh, kw)."""
    N, C_in, H, W = x.shape
    C_out, C_in_w, kh, kw = weight.shape
    assert C_in_w == C_in, "groups != 1 is not supported"

    # NHWC bf16 once, before im2col: halves patch-matrix HBM bytes and avoids
    # transposing the kh*kw-amplified tensor.
    x_nhwc = jnp.transpose(x, (0, 2, 3, 1)).astype(jnp.bfloat16)
    patches, H_out, W_out = _im2col_nhwc(x_nhwc, kh, kw, stride, padding)
    M, K = patches.shape

    K_pad = _round_up(K, 128)
    C_out_pad = _round_up(C_out, 128)

    # N tile: as wide as lane-density allows -> fewer passes over the patch
    # matrix, higher arithmetic intensity.
    if C_out_pad % 512 == 0:
        tile_n = 512
    elif C_out_pad % 256 == 0:
        tile_n = 256
    else:
        tile_n = 128
    n_n = C_out_pad // tile_n

    # K tile: keep the whole K resident when moderate; then the k grid axis
    # and the accumulator disappear entirely.
    if K_pad <= 2048:
        tile_k = K_pad
    elif K_pad % 512 == 0:
        tile_k = 512
    elif K_pad % 256 == 0:
        tile_k = 256
    else:
        tile_k = 128
    n_k = K_pad // tile_k

    # M tile: big (amortizes ~0.35us per grid step), then split so the
    # parallel grid has >= 2 blocks for dual-TensorCore chips (v7x).
    tile_m = min(tile_m, _round_up(M, 8))
    M_pad = _round_up(M, tile_m)
    n_m = M_pad // tile_m
    if n_m * n_n == 1 and M_pad % 16 == 0:
        tile_m = M_pad // 2
        n_m = 2

    if M_pad != M or K_pad != K:
        patches = jnp.pad(patches, ((0, M_pad - M), (0, K_pad - K)))

    # Weight: (C_out, C_in, kh, kw) -> (K, C_out), K order (kh, kw, C_in).
    w2d = weight.transpose(0, 2, 3, 1).reshape(C_out, K).T
    w2d = jnp.pad(w2d.astype(jnp.bfloat16),
                  ((0, K_pad - K), (0, C_out_pad - C_out)))

    affine = bn or (conv_bias is not None)
    operands = [patches, w2d]
    if affine:
        if bn:
            gamma, beta, running_mean, running_var, eps = bn_params
            scale = gamma / jnp.sqrt(running_var + eps)          # (C_out,)
            bias = beta - running_mean * scale                   # (C_out,)
        else:
            scale = jnp.ones((C_out,), jnp.float32)
            bias = jnp.zeros((C_out,), jnp.float32)
        if conv_bias is not None:
            bias = bias + scale * conv_bias
        scale2d = jnp.pad(scale.reshape(1, C_out).astype(jnp.float32),
                          ((0, 0), (0, C_out_pad - C_out)))
        bias2d = jnp.pad(bias.reshape(1, C_out).astype(jnp.float32),
                         ((0, 0), (0, C_out_pad - C_out)))
        operands += [scale2d, bias2d]

    multi_k = n_k > 1
    kernel = _make_kernel(affine=affine, relu=relu, multi_k=multi_k)

    if multi_k:
        grid = (n_m, n_n, n_k)
        p_spec = pl.BlockSpec((tile_m, tile_k), lambda i, j, k: (i, k))
        w_spec = pl.BlockSpec((tile_k, tile_n), lambda i, j, k: (k, j))
        sb_spec = pl.BlockSpec((1, tile_n), lambda i, j, k: (0, j))
        out_spec = pl.BlockSpec((tile_m, tile_n), lambda i, j, k: (i, j))
        dims = ("parallel", "parallel", "arbitrary")
    else:
        grid = (n_m, n_n)
        p_spec = pl.BlockSpec((tile_m, tile_k), lambda i, j: (i, 0))
        w_spec = pl.BlockSpec((tile_k, tile_n), lambda i, j: (0, j))
        sb_spec = pl.BlockSpec((1, tile_n), lambda i, j: (0, j))
        out_spec = pl.BlockSpec((tile_m, tile_n), lambda i, j: (i, j))
        dims = ("parallel", "parallel")

    in_specs = [p_spec, w_spec]
    if affine:
        in_specs += [sb_spec, sb_spec]

    # VMEM budget: double-buffered bf16 inputs + f32 output (no acc scratch).
    vmem_bytes = (2 * tile_m * tile_k * 2
                  + 2 * tile_k * tile_n * 2
                  + 2 * tile_m * tile_n * 4
                  + (4 * tile_n * 4 if affine else 0))
    try:
        vmem_capacity = pltpu.get_tpu_info().vmem_capacity_bytes
    except Exception:  # pragma: no cover - conservative default (v7x-sized)
        vmem_capacity = 64 * 1024 * 1024
    vmem_cap = int(0.75 * vmem_capacity)        # ~96 MiB v5e/v6e, ~48 MiB v7x
    vmem_limit = min(max(2 * vmem_bytes, 32 * 1024 * 1024), vmem_cap)
    vmem_limit = max(vmem_limit, vmem_bytes + (4 << 20))

    cost = pl.CostEstimate(
        flops=2 * M_pad * K_pad * C_out_pad,
        transcendentals=0,
        bytes_accessed=(M_pad * K_pad * 2
                        + K_pad * C_out_pad * 2
                        + M_pad * C_out_pad * 4),
    )

    out2d = pl.pallas_call(
        kernel,
        out_shape=jax.ShapeDtypeStruct((M_pad, C_out_pad), jnp.float32),
        grid_spec=pltpu.PrefetchScalarGridSpec(
            num_scalar_prefetch=0,
            grid=grid,
            in_specs=in_specs,
            out_specs=out_spec,
        ),
        compiler_params=pltpu.CompilerParams(
            dimension_semantics=dims,
            vmem_limit_bytes=vmem_limit),
        cost_estimate=cost,
    )(*operands)

    # Drop padding; (N*H_out*W_out, C_out) -> (N, C_out, H_out, W_out).
    out = out2d[:M, :C_out].reshape(N, H_out, W_out, C_out)
    return out.transpose(0, 3, 1, 2)


def _reference(x, weight, bn_params, *, stride, padding, relu, bn):
    y = jax.lax.conv_general_dilated(
        x, weight, window_strides=(stride, stride),
        padding=[(padding, padding), (padding, padding)],
        dimension_numbers=("NCHW", "OIHW", "NCHW"))
    if bn:
        gamma, beta, mean, var, eps = bn_params
        scale = (gamma / jnp.sqrt(var + eps)).reshape(1, -1, 1, 1)
        bias = (beta - mean * gamma / jnp.sqrt(var + eps)).reshape(1, -1, 1, 1)
        y = y * scale + bias
    if relu:
        y = jnp.maximum(y, 0.0)
    return y


if __name__ == "__main__":
    key = jax.random.PRNGKey(0)
    k_x, k_w, k_g, k_b, k_m, k_v = jax.random.split(key, 6)

    # Small BasicConv config: in_planes=4, out_planes=8, kernel_size=3,
    # stride=1, padding=1, bias=False, bn=True, relu=True.
    N, C_in, H, W = 2, 4, 16, 16
    C_out, kh, kw = 8, 3, 3
    stride, padding = 1, 1

    x = jax.random.normal(k_x, (N, C_in, H, W), jnp.float32)
    weight = jax.random.normal(k_w, (C_out, C_in, kh, kw), jnp.float32) * 0.1

    gamma = jax.random.normal(k_g, (C_out,), jnp.float32) * 0.1 + 1.0
    beta = jax.random.normal(k_b, (C_out,), jnp.float32) * 0.1
    running_mean = jax.random.normal(k_m, (C_out,), jnp.float32) * 0.1
    running_var = jax.nn.softplus(
        jax.random.normal(k_v, (C_out,), jnp.float32)) + 0.5
    eps = 1e-5
    bn_params = (gamma, beta, running_mean, running_var, eps)

    # Jit the whole wrapper so im2col, padding, the [:M,:C_out] slice and the
    # NHWC->NCHW transpose fuse with the pallas_call in one program.
    fwd = jax.jit(functools.partial(
        basic_conv_forward, stride=stride, padding=padding, relu=True, bn=True))
    out = jax.block_until_ready(fwd(x, weight, bn_params))

    # Reference on the same bf16-rounded inputs the kernel consumes, so the
    # only difference is f32 accumulation order on the MXU.
    x_q = x.astype(jnp.bfloat16).astype(jnp.float32)
    w_q = weight.astype(jnp.bfloat16).astype(jnp.float32)
    ref = _reference(x_q, w_q, bn_params,
                     stride=stride, padding=padding, relu=True, bn=True)

    assert out.shape == (N, C_out, H, W), out.shape
    assert jnp.allclose(out, ref, atol=2e-3, rtol=2e-3), \
        float(jnp.max(jnp.abs(out - ref)))

    print("KERNEL_OK")
</pallas_src>

<mosaic_0001>
module attributes {stable_mosaic.version = 11 : i64} {
  func.func @kernel(%arg0: i32, %arg1: i32, %arg2: memref<256x128xbf16, #tpu.memory_space<vmem>>, %arg3: memref<128x128xbf16, #tpu.memory_space<vmem>>, %arg4: memref<1x128xf32, #tpu.memory_space<vmem>>, %arg5: memref<1x128xf32, #tpu.memory_space<vmem>>, %arg6: memref<256x128xf32, #tpu.memory_space<vmem>>) attributes {dimension_semantics = [#tpu.dimension_semantics<parallel>, #tpu.dimension_semantics<parallel>], iteration_bounds = array<i64: 2, 1>, scalar_prefetch = 0 : i64, scratch_operands = 0 : i64, tpu.core_type = #tpu.core_type<tc>, window_params = [{transform_indices = @transform_0, window_bounds = array<i64: 256, 128>}, {transform_indices = @transform_1, window_bounds = array<i64: 128, 128>}, {transform_indices = @transform_2, window_bounds = array<i64: 1, 128>}, {transform_indices = @transform_3, window_bounds = array<i64: 1, 128>}, {transform_indices = @transform_4, window_bounds = array<i64: 256, 128>}]} {
    %c0 = arith.constant 0 : index
    %c0_0 = arith.constant 0 : index
    %0 = vector.load %arg2[%c0, %c0_0] : memref<256x128xbf16, #tpu.memory_space<vmem>>, vector<256x128xbf16>
    %c0_1 = arith.constant 0 : index
    %c0_2 = arith.constant 0 : index
    %1 = vector.load %arg3[%c0_1, %c0_2] : memref<128x128xbf16, #tpu.memory_space<vmem>>, vector<128x128xbf16>
    %cst = arith.constant dense<0.000000e+00> : vector<256x128xf32>
    %2 = tpu.matmul %0, %1, %cst {dimension_numbers = #tpu.dot_dimension_numbers<[1], [0], [0], [1], [0, 0, 1, 1], [], []>} : vector<256x128xbf16>, vector<128x128xbf16>, vector<256x128xf32> -> vector<256x128xf32>
    %c0_3 = arith.constant 0 : index
    %c0_4 = arith.constant 0 : index
    %3 = vector.load %arg4[%c0_3, %c0_4] : memref<1x128xf32, #tpu.memory_space<vmem>>, vector<1x128xf32>
    %c0_5 = arith.constant 0 : index
    %c0_6 = arith.constant 0 : index
    %4 = vector.load %arg5[%c0_5, %c0_6] : memref<1x128xf32, #tpu.memory_space<vmem>>, vector<1x128xf32>
    %5 = vector.broadcast %3 : vector<1x128xf32> to vector<256x128xf32>
    %6 = arith.mulf %2, %5 : vector<256x128xf32>
    %7 = vector.broadcast %4 : vector<1x128xf32> to vector<256x128xf32>
    %8 = arith.addf %6, %7 : vector<256x128xf32>
    %cst_7 = arith.constant 0.000000e+00 : f32
    %9 = vector.broadcast %cst_7 : f32 to vector<256x128xf32>
    %10 = arith.maximumf %8, %9 : vector<256x128xf32>
    %c0_8 = arith.constant 0 : index
    %c0_9 = arith.constant 0 : index
    %11 = vector.load %arg6[%c0_8, %c0_9] : memref<256x128xf32, #tpu.memory_space<vmem>>, vector<256x128xf32>
    tpu.vector_store %arg6[%c0_8, %c0_9], %10 {strides = array<i32>} : memref<256x128xf32, #tpu.memory_space<vmem>>, vector<256x128xf32>,
    return
  }
  func.func @transform_0(%arg0: i32, %arg1: i32) -> (i32, i32) {
    %c0_i32 = arith.constant 0 : i32
    %c0_i32_0 = arith.constant 0 : i32
    return %arg0, %c0_i32 : i32, i32
  }
  func.func @transform_1(%arg0: i32, %arg1: i32) -> (i32, i32) {
    %c0_i32 = arith.constant 0 : i32
    %c0_i32_0 = arith.constant 0 : i32
    return %c0_i32, %arg1 : i32, i32
  }
  func.func @transform_2(%arg0: i32, %arg1: i32) -> (i32, i32) {
    %c0_i32 = arith.constant 0 : i32
    %c0_i32_0 = arith.constant 0 : i32
    return %c0_i32, %arg1 : i32, i32
  }
  func.func @transform_3(%arg0: i32, %arg1: i32) -> (i32, i32) {
    %c0_i32 = arith.constant 0 : i32
    %c0_i32_0 = arith.constant 0 : i32
    return %c0_i32, %arg1 : i32, i32
  }
  func.func @transform_4(%arg0: i32, %arg1: i32) -> (i32, i32) {
    %c0_i32 = arith.constant 0 : i32
    return %arg0, %arg1 : i32, i32
  }
}

</mosaic_0001>

<bundles_post_ra>
// kernel: basic_conv_forward.1
= control target key start
LH: loop header
LB: loop body
LE: loop exit
PB: predicated region body
PF: predicated region fallthrough
CT: control target
= control target key end

     0   :  { %s1030_s15 = smov 0   ;;  %s1032_s16 = smov 0   ;;  %s1220_s0 = inlined_call_operand.vmem [shape: bf16[512,128], index: 0, kind: input, shape index: {}]   ;;  %s1221_s1 = inlined_call_operand.vmem [shape: bf16[128,128], index: 1, kind: input, shape index: {}]   ;;  %s1222_s2 = inlined_call_operand.vmem [shape: f32[1,128], index: 2, kind: input, shape index: {}]   ;;  %s1223_s3 = inlined_call_operand.vmem [shape: f32[1,128], index: 3, kind: input, shape index: {}]   ;;  %s1224_s4 = inlined_call_operand.vmem [shape: f32[512,128], index: 4, kind: output, shape index: {}]  }
   0x1   :  { %s1034_s17 = smov 0  }
   0x2 LB: > { %s26_s18 = sadd.s32 1, %s999_s16  ;;  %p804_p0 = scmp.ge.s32.totalorder %s1003_s17, 1  ;;  %s1003_s17 = sphi %s1034_s17, %s14_s17   ;;  %s999_s16 = sphi %s1032_s16, %s1226_s16   ;;  %s995_s15 = sphi %s1030_s15, %s1225_s15  }
   0x3   : > { %p28_p1 = scmp.ge.s32.totalorder %s26_s18, 2  ;;  %p202_p2 = scmp.lt.s32.totalorder %s1003_s17, 3 }
   0x5   : > { %s1228_s18 = smov (%p28_p1, %s26_s18), 0  ;;  %p203_p3 = pnand %p804_p0, %p202_p2 }
   0x6   : > { %s805_s27 = sshll.u32 (!%p203_p3), %s995_s15, 5 }
   0x7   : > { %206 = sbr.rel (%p203_p3) target bundleno = 241 (0xf1), region = 36  ;;  %p242_p4 = scmp.lt.s32.totalorder (!%p203_p3), %s805_s27, 63 }
   0xc   : > { %v930_v0 = vld [vmem:[%s1221_s1 + $0x38] sm:$0xff]  ;;  %v929_v1 = vld [vmem:[%s1221_s1 + $0x30] sm:$0xff]  ;;  %v928_v2 = vld [vmem:[%s1221_s1 + $0x28] sm:$0xff]  ;;  %s1230_s27 = smov (!%p242_p4, %s805_s27), 63 }
   0xd   : > { %458 = vmatpush.bf16.msra.mxu0 %v930_v0  ;;  %931 = vmatpush.bf16.msra.mxu1 %v930_v0  ;;  %v927_v3 = vld [vmem:[%s1221_s1 + $0x20] sm:$0xff]  ;;  %v926_v4 = vld [vmem:[%s1221_s1 + $0x18] sm:$0xff]  ;;  %v925_v5 = vld [vmem:[%s1221_s1 + $0x10] sm:$0xff]  ;;  %s806_s8 = sshll.u32 %s1230_s27, 2  ;;  %s808_s21 = sshll.u32 %s1230_s27, 3 }
   0xe   : > { %932 = vmatpush.bf16.msra.mxu2 %v930_v0  ;;  %933 = vmatpush.bf16.msra.mxu3 %v930_v0  ;;  %v924_v6 = vld [vmem:[%s1221_s1 + $0x8] sm:$0xff]  ;;  %v923_v7 = vld [vmem:[%s1221_s1] sm:$0xff]  ;;  %s1081_s13 = scalar_lea.vmem %s1220_s0, %s806_s8  ;;  %s1117_s24 = scalar_lea.vmem %s1224_s4, %s808_s21 }
   0xf   : > { %v907_v8 = vld [vmem:[%s1081_s13] sm:$0xff]  ;;  %v908_v12 = vld [vmem:[%s1081_s13 + $0x8] sm:$0xff]  ;;  %v909_v16 = vld [vmem:[%s1081_s13 + $0x10] sm:$0xff] }
  0x10   : > { %v911_v9 = vld [vmem:[%s1081_s13 + $0x20] sm:$0xff]  ;;  %v912_v13 = vld [vmem:[%s1081_s13 + $0x28] sm:$0xff]  ;;  %v913_v17 = vld [vmem:[%s1081_s13 + $0x30] sm:$0xff] }
  0x11   : > { %459 = vmatpush.bf16.msra.mxu0 %v929_v1  ;;  %934 = vmatpush.bf16.msra.mxu1 %v929_v1  ;;  %v915_v10 = vld [vmem:[%s1081_s13 + $0x40] sm:$0xff]  ;;  %v916_v14 = vld [vmem:[%s1081_s13 + $0x48] sm:$0xff]  ;;  %v917_v18 = vld [vmem:[%s1081_s13 + $0x50] sm:$0xff] }
  0x12   : > { %935 = vmatpush.bf16.msra.mxu2 %v929_v1  ;;  %936 = vmatpush.bf16.msra.mxu3 %v929_v1  ;;  %v919_v11 = vld [vmem:[%s1081_s13 + $0x60] sm:$0xff]  ;;  %v920_v15 = vld [vmem:[%s1081_s13 + $0x68] sm:$0xff]  ;;  %v921_v19 = vld [vmem:[%s1081_s13 + $0x70] sm:$0xff] }
  0x13   : > { %v910_v20 = vld [vmem:[%s1081_s13 + $0x18] sm:$0xff]  ;;  %v1102_v24 = vld [vmem:[%s1222_s2] ss:$0 sm:$0xff] }
  0x14   : > { %v914_v21 = vld [vmem:[%s1081_s13 + $0x38] sm:$0xff]  ;;  %v1107_v25 = vld [vmem:[%s1223_s3] ss:$0 sm:$0xff] }
  0x15   : > { %460 = vmatpush.bf16.msra.mxu0 %v928_v2  ;;  %937 = vmatpush.bf16.msra.mxu1 %v928_v2  ;;  %v918_v22 = vld [vmem:[%s1081_s13 + $0x58] sm:$0xff] }
  0x16   : > { %938 = vmatpush.bf16.msra.mxu2 %v928_v2  ;;  %939 = vmatpush.bf16.msra.mxu3 %v928_v2  ;;  %v922_v23 = vld [vmem:[%s1081_s13 + $0x78] sm:$0xff] }
  0x19   : > { %461 = vmatpush.bf16.msra.mxu0 %v927_v3  ;;  %940 = vmatpush.bf16.msra.mxu1 %v927_v3 }
  0x1a   : > { %941 = vmatpush.bf16.msra.mxu2 %v927_v3  ;;  %942 = vmatpush.bf16.msra.mxu3 %v927_v3 }
  0x1d   : > { %462 = vmatpush.bf16.msra.mxu0 %v926_v4  ;;  %943 = vmatpush.bf16.msra.mxu1 %v926_v4 }
  0x1e   : > { %944 = vmatpush.bf16.msra.mxu2 %v926_v4  ;;  %945 = vmatpush.bf16.msra.mxu3 %v926_v4 }
  0x21   : > { %463 = vmatpush.bf16.msra.mxu0 %v925_v5  ;;  %946 = vmatpush.bf16.msra.mxu1 %v925_v5 }
  0x22   : > { %947 = vmatpush.bf16.msra.mxu2 %v925_v5  ;;  %948 = vmatpush.bf16.msra.mxu3 %v925_v5 }
  0x25   : > { %464 = vmatpush.bf16.msra.mxu0 %v924_v6  ;;  %949 = vmatpush.bf16.msra.mxu1 %v924_v6 }
  0x26   : > { %950 = vmatpush.bf16.msra.mxu2 %v924_v6  ;;  %951 = vmatpush.bf16.msra.mxu3 %v924_v6 }
  0x29   : > { %465 = vmatpush.bf16.msra.mxu0 %v923_v7  ;;  %952 = vmatpush.bf16.msra.mxu1 %v923_v7 }
  0x2a   : > { %953 = vmatpush.bf16.msra.mxu2 %v923_v7  ;;  %954 = vmatpush.bf16.msra.mxu3 %v923_v7 }
  0x2c   : > { %466 = vmatmul.bf16.vlgmr.msra.gmra.mxu0 %v907_v8  ;;  %486 = vmatmul.bf16.vlgmr.msra.gmra.mxu1 %v911_v9 }
  0x2d   : > { %506 = vmatmul.bf16.vlgmr.msra.gmra.mxu2 %v915_v10  ;;  %526 = vmatmul.bf16.vlgmr.msra.gmra.mxu3 %v919_v11 }
  0x3c   : > { %471 = vmatmul.bf16.gmra.mxu0 %v908_v12  ;;  %491 = vmatmul.bf16.gmra.mxu1 %v912_v13 }
  0x3d   : > { %511 = vmatmul.bf16.gmra.mxu2 %v916_v14  ;;  %531 = vmatmul.bf16.gmra.mxu3 %v920_v15 }
  0x4c   : > { %476 = vmatmul.bf16.gmra.mxu0 %v909_v16  ;;  %496 = vmatmul.bf16.gmra.mxu1 %v913_v17 }
  0x4d   : > { %516 = vmatmul.bf16.gmra.mxu2 %v917_v18  ;;  %536 = vmatmul.bf16.gmra.mxu3 %v921_v19 }
  0x5c   : > { %481 = vmatmul.bf16.gmra.mxu0 %v910_v20  ;;  %501 = vmatmul.bf16.gmra.mxu1 %v914_v21 }
  0x5d   : > { %521 = vmatmul.bf16.gmra.mxu2 %v918_v22  ;;  %541 = vmatmul.bf16.gmra.mxu3 %v922_v23 }
  0xa9   : > { %v467_v26 = vpop.f32.mrf.mxu0  ;;  %v487_v27 = vpop.f32.mrf.mxu1 }
  0xaa   : > { %v552_v28 = vmul.f32 %v1102_v24, %v467_v26  ;;  %v560_v29 = vmul.f32 %v1102_v24, %v487_v27 }
  0xac   : > { %v587_v30 = vadd.f32 %v1107_v25, %v552_v28  ;;  %v595_v31 = vadd.f32 %v1107_v25, %v560_v29 }
  0xae   : > { %v619_v32 = vmax.f32 %v587_v30, 0.0  ;;  %v627_v33 = vmax.f32 %v595_v31, 0.0 }
  0xb0   : > { %651 = vst [vmem:[%s1117_s24] sm:$0xff] %v619_v32  ;;  %v507_v34 = vpop.f32.mrf.mxu2  ;;  %v527_v35 = vpop.f32.mrf.mxu3 }
  0xb1   : > { %659 = vst [vmem:[%s1117_s24 + $0x40] sm:$0xff] %v627_v33  ;;  %v568_v36 = vmul.f32 %v1102_v24, %v507_v34  ;;  %v576_v37 = vmul.f32 %v1102_v24, %v527_v35  ;;  %v469_v38 = vpop.f32.mrf.mxu0  ;;  %v489_v39 = vpop.f32.mrf.mxu1 }
  0xb2   : > { %v553_v40 = vmul.f32 %v1102_v24, %v469_v38  ;;  %v561_v41 = vmul.f32 %v1102_v24, %v489_v39 }
  0xb3   : > { %v603_v42 = vadd.f32 %v1107_v25, %v568_v36  ;;  %v611_v43 = vadd.f32 %v1107_v25, %v576_v37 }
  0xb4   : > { %v588_v44 = vadd.f32 %v1107_v25, %v553_v40  ;;  %v596_v45 = vadd.f32 %v1107_v25, %v561_v41 }
  0xb5   : > { %v635_v46 = vmax.f32 %v603_v42, 0.0  ;;  %v643_v47 = vmax.f32 %v611_v43, 0.0 }
  0xb6   : > { %v620_v48 = vmax.f32 %v588_v44, 0.0  ;;  %v628_v49 = vmax.f32 %v596_v45, 0.0 }
  0xb7   : > { %667 = vst [vmem:[%s1117_s24 + $0x80] sm:$0xff] %v635_v46 }
  0xb8   : > { %675 = vst [vmem:[%s1117_s24 + $0xc0] sm:$0xff] %v643_v47  ;;  %v509_v50 = vpop.f32.mrf.mxu2  ;;  %v529_v51 = vpop.f32.mrf.mxu3 }
  0xb9   : > { %652 = vst [vmem:[%s1117_s24 + $0x8] sm:$0xff] %v620_v48  ;;  %v569_v52 = vmul.f32 %v1102_v24, %v509_v50  ;;  %v577_v53 = vmul.f32 %v1102_v24, %v529_v51  ;;  %v472_v54 = vpop.f32.mrf.mxu0  ;;  %v492_v55 = vpop.f32.mrf.mxu1 }
  0xba   : > { %660 = vst [vmem:[%s1117_s24 + $0x48] sm:$0xff] %v628_v49  ;;  %v554_v56 = vmul.f32 %v1102_v24, %v472_v54  ;;  %v562_v57 = vmul.f32 %v1102_v24, %v492_v55 }
  0xbb   : > { %v604_v58 = vadd.f32 %v1107_v25, %v569_v52  ;;  %v612_v59 = vadd.f32 %v1107_v25, %v577_v53 }
  0xbc   : > { %v589_v60 = vadd.f32 %v1107_v25, %v554_v56  ;;  %v597_v61 = vadd.f32 %v1107_v25, %v562_v57 }
  0xbd   : > { %v636_v62 = vmax.f32 %v604_v58, 0.0  ;;  %v644_v63 = vmax.f32 %v612_v59, 0.0 }
  0xbe   : > { %v621_v0 = vmax.f32 %v589_v60, 0.0  ;;  %v629_v1 = vmax.f32 %v597_v61, 0.0 }
  0xbf   : > { %668 = vst [vmem:[%s1117_s24 + $0x88] sm:$0xff] %v636_v62 }
  0xc0   : > { %676 = vst [vmem:[%s1117_s24 + $0xc8] sm:$0xff] %v644_v63  ;;  %v512_v2 = vpop.f32.mrf.mxu2  ;;  %v532_v3 = vpop.f32.mrf.mxu3 }
  0xc1   : > { %653 = vst [vmem:[%s1117_s24 + $0x10] sm:$0xff] %v621_v0  ;;  %v570_v4 = vmul.f32 %v1102_v24, %v512_v2  ;;  %v578_v5 = vmul.f32 %v1102_v24, %v532_v3  ;;  %v474_v6 = vpop.f32.mrf.mxu0  ;;  %v494_v7 = vpop.f32.mrf.mxu1 }
  0xc2   : > { %661 = vst [vmem:[%s1117_s24 + $0x50] sm:$0xff] %v629_v1  ;;  %v555_v8 = vmul.f32 %v1102_v24, %v474_v6  ;;  %v563_v9 = vmul.f32 %v1102_v24, %v494_v7 }
  0xc3   : > { %v605_v10 = vadd.f32 %v1107_v25, %v570_v4  ;;  %v613_v11 = vadd.f32 %v1107_v25, %v578_v5 }
  0xc4   : > { %v590_v12 = vadd.f32 %v1107_v25, %v555_v8  ;;  %v598_v13 = vadd.f32 %v1107_v25, %v563_v9 }
  0xc5   : > { %v637_v14 = vmax.f32 %v605_v10, 0.0  ;;  %v645_v15 = vmax.f32 %v613_v11, 0.0 }
  0xc6   : > { %v622_v16 = vmax.f32 %v590_v12, 0.0  ;;  %v630_v17 = vmax.f32 %v598_v13, 0.0 }
  0xc7   : > { %669 = vst [vmem:[%s1117_s24 + $0x90] sm:$0xff] %v637_v14 }
  0xc8   : > { %677 = vst [vmem:[%s1117_s24 + $0xd0] sm:$0xff] %v645_v15  ;;  %v514_v18 = vpop.f32.mrf.mxu2  ;;  %v534_v19 = vpop.f32.mrf.mxu3 }
  0xc9   : > { %654 = vst [vmem:[%s1117_s24 + $0x18] sm:$0xff] %v622_v16  ;;  %v571_v20 = vmul.f32 %v1102_v24, %v514_v18  ;;  %v579_v21 = vmul.f32 %v1102_v24, %v534_v19  ;;  %v477_v22 = vpop.f32.mrf.mxu0  ;;  %v497_v23 = vpop.f32.mrf.mxu1 }
  0xca   : > { %662 = vst [vmem:[%s1117_s24 + $0x58] sm:$0xff] %v630_v17  ;;  %v556_v26 = vmul.f32 %v1102_v24, %v477_v22  ;;  %v564_v27 = vmul.f32 %v1102_v24, %v497_v23 }
  0xcb   : > { %v606_v28 = vadd.f32 %v1107_v25, %v571_v20  ;;  %v614_v29 = vadd.f32 %v1107_v25, %v579_v21 }
  0xcc   : > { %v591_v30 = vadd.f32 %v1107_v25, %v556_v26  ;;  %v599_v31 = vadd.f32 %v1107_v25, %v564_v27 }
  0xcd   : > { %v638_v32 = vmax.f32 %v606_v28, 0.0  ;;  %v646_v33 = vmax.f32 %v614_v29, 0.0 }
  0xce   : > { %v623_v34 = vmax.f32 %v591_v30, 0.0  ;;  %v631_v35 = vmax.f32 %v599_v31, 0.0 }
  0xcf   : > { %670 = vst [vmem:[%s1117_s24 + $0x98] sm:$0xff] %v638_v32 }
  0xd0   : > { %678 = vst [vmem:[%s1117_s24 + $0xd8] sm:$0xff] %v646_v33  ;;  %v517_v36 = vpop.f32.mrf.mxu2  ;;  %v537_v37 = vpop.f32.mrf.mxu3 }
  0xd1   : > { %655 = vst [vmem:[%s1117_s24 + $0x20] sm:$0xff] %v623_v34  ;;  %v572_v38 = vmul.f32 %v1102_v24, %v517_v36  ;;  %v580_v39 = vmul.f32 %v1102_v24, %v537_v37  ;;  %v479_v40 = vpop.f32.mrf.mxu0  ;;  %v499_v41 = vpop.f32.mrf.mxu1 }
  0xd2   : > { %663 = vst [vmem:[%s1117_s24 + $0x60] sm:$0xff] %v631_v35  ;;  %v557_v42 = vmul.f32 %v1102_v24, %v479_v40  ;;  %v565_v43 = vmul.f32 %v1102_v24, %v499_v41 }
  0xd3   : > { %v607_v44 = vadd.f32 %v1107_v25, %v572_v38  ;;  %v615_v45 = vadd.f32 %v1107_v25, %v580_v39 }
  0xd4   : > { %v592_v46 = vadd.f32 %v1107_v25, %v557_v42  ;;  %v600_v47 = vadd.f32 %v1107_v25, %v565_v43 }
  0xd5   : > { %v639_v48 = vmax.f32 %v607_v44, 0.0  ;;  %v647_v49 = vmax.f32 %v615_v45, 0.0 }
  0xd6   : > { %v624_v50 = vmax.f32 %v592_v46, 0.0  ;;  %v632_v51 = vmax.f32 %v600_v47, 0.0 }
  0xd7   : > { %671 = vst [vmem:[%s1117_s24 + $0xa0] sm:$0xff] %v639_v48 }
  0xd8   : > { %679 = vst [vmem:[%s1117_s24 + $0xe0] sm:$0xff] %v647_v49  ;;  %v519_v52 = vpop.f32.mrf.mxu2  ;;  %v539_v53 = vpop.f32.mrf.mxu3 }
  0xd9   : > { %656 = vst [vmem:[%s1117_s24 + $0x28] sm:$0xff] %v624_v50  ;;  %v573_v54 = vmul.f32 %v1102_v24, %v519_v52  ;;  %v581_v55 = vmul.f32 %v1102_v24, %v539_v53  ;;  %v482_v56 = vpop.f32.mrf.mxu0  ;;  %v502_v57 = vpop.f32.mrf.mxu1 }
  0xda   : > { %664 = vst [vmem:[%s1117_s24 + $0x68] sm:$0xff] %v632_v51  ;;  %v558_v58 = vmul.f32 %v1102_v24, %v482_v56  ;;  %v566_v59 = vmul.f32 %v1102_v24, %v502_v57 }
  0xdb   : > { %v608_v60 = vadd.f32 %v1107_v25, %v573_v54  ;;  %v616_v61 = vadd.f32 %v1107_v25, %v581_v55 }
  0xdc   : > { %v593_v62 = vadd.f32 %v1107_v25, %v558_v58  ;;  %v601_v63 = vadd.f32 %v1107_v25, %v566_v59 }
  0xdd   : > { %v640_v0 = vmax.f32 %v608_v60, 0.0  ;;  %v648_v1 = vmax.f32 %v616_v61, 0.0 }
  0xde   : > { %v625_v2 = vmax.f32 %v593_v62, 0.0  ;;  %v633_v3 = vmax.f32 %v601_v63, 0.0 }
  0xdf   : > { %672 = vst [vmem:[%s1117_s24 + $0xa8] sm:$0xff] %v640_v0 }
  0xe0   : > { %680 = vst [vmem:[%s1117_s24 + $0xe8] sm:$0xff] %v648_v1  ;;  %v522_v4 = vpop.f32.mrf.mxu2  ;;  %v542_v5 = vpop.f32.mrf.mxu3 }
  0xe1   : > { %657 = vst [vmem:[%s1117_s24 + $0x30] sm:$0xff] %v625_v2  ;;  %v574_v6 = vmul.f32 %v1102_v24, %v522_v4  ;;  %v582_v7 = vmul.f32 %v1102_v24, %v542_v5  ;;  %v484_v8 = vpop.f32.mrf.mxu0  ;;  %v504_v9 = vpop.f32.mrf.mxu1 }
  0xe2   : > { %665 = vst [vmem:[%s1117_s24 + $0x70] sm:$0xff] %v633_v3  ;;  %v559_v10 = vmul.f32 %v1102_v24, %v484_v8  ;;  %v567_v11 = vmul.f32 %v1102_v24, %v504_v9 }
  0xe3   : > { %v609_v12 = vadd.f32 %v1107_v25, %v574_v6  ;;  %v617_v13 = vadd.f32 %v1107_v25, %v582_v7 }
  0xe4   : > { %v594_v14 = vadd.f32 %v1107_v25, %v559_v10  ;;  %v602_v15 = vadd.f32 %v1107_v25, %v567_v11 }
  0xe5   : > { %v641_v16 = vmax.f32 %v609_v12, 0.0  ;;  %v649_v17 = vmax.f32 %v617_v13, 0.0 }
  0xe6   : > { %v626_v18 = vmax.f32 %v594_v14, 0.0  ;;  %v634_v19 = vmax.f32 %v602_v15, 0.0 }
  0xe7   : > { %673 = vst [vmem:[%s1117_s24 + $0xb0] sm:$0xff] %v641_v16 }
  0xe8   : > { %681 = vst [vmem:[%s1117_s24 + $0xf0] sm:$0xff] %v649_v17  ;;  %v524_v20 = vpop.f32.mrf.mxu2  ;;  %v544_v21 = vpop.f32.mrf.mxu3 }
  0xe9   : > { %658 = vst [vmem:[%s1117_s24 + $0x38] sm:$0xff] %v626_v18  ;;  %v575_v22 = vmul.f32 %v1102_v24, %v524_v20  ;;  %v583_v23 = vmul.f32 %v1102_v24, %v544_v21 }
  0xea   : > { %666 = vst [vmem:[%s1117_s24 + $0x78] sm:$0xff] %v634_v19 }
  0xeb   : > { %v610_v26 = vadd.f32 %v1107_v25, %v575_v22  ;;  %v618_v27 = vadd.f32 %v1107_v25, %v583_v23 }
  0xed   : > { %v642_v28 = vmax.f32 %v610_v26, 0.0  ;;  %v650_v29 = vmax.f32 %v618_v27, 0.0 }
  0xef   : > { %674 = vst [vmem:[%s1117_s24 + $0xb8] sm:$0xff] %v642_v28 }
  0xf0   : > { %682 = vst [vmem:[%s1117_s24 + $0xf8] sm:$0xff] %v650_v29 }
  0xf1 PF: > { %s14_s17 = sadd.s32 1, %s1003_s17   ;;  %s1225_s15 = smov %s999_s16 }
  0xf2   : > { %p11_p5 = scmp.ge.s32.totalorder %s14_s17, 4   ;;  %s1226_s16 = smov %s1228_s18 }
  0xf4   :  { %13 = sbr.rel (!%p11_p5) target bundleno = 2 (0x2), region = 75 }

</bundles_post_ra>
